<compile_context>
chip_gen: v6e
topology: v6e:2x2x1
jax: 0.10.0
libtpu: 0.0.40
codegen_flags: <defaults>
</compile_context>

<pallas_src>
import jax
import jax.numpy as jnp
from jax.experimental import pallas as pl
from jax.experimental.pallas import tpu as pltpu


def _round8(n):
    return 8 * ((n + 7) // 8)


def _pack_params(params, action_mask, in_dim, hidden_dim, out_dim):
    """Pack 4 weights, 4 biases and the action mask into two f32 slabs.

    wslab row layout (all block starts 8-aligned):
      [0  : in_dim )      w1  (in_dim, C)
      [r1 : r1 + C )      w2  (C, C)
      [r2 : r2 + C )      w3  (C, C)
      [r3 : r3 + C )      w4  (C, C)   (cols >= out_dim are zero)
    bslab (8, C): rows 0..3 = b1..b4 (zero-padded), row 4 = action_mask.

    C = max(hidden_dim, out_dim).  Any padded hidden columns stay exactly 0
    through every layer (zero weights + zero bias + relu), so the math is
    unchanged; padded logit columns are sliced off before the softmax.
    """
    w1, b1, w2, b2, w3, b3, w4, b4 = params
    C = max(hidden_dim, out_dim)
    r1 = _round8(in_dim)
    r2 = r1 + _round8(C)
    r3 = r2 + _round8(C)
    R = r3 + _round8(C)

    def put(slab, row, w):
        return slab.at[row:row + w.shape[0], :w.shape[1]].set(
            w.astype(jnp.float32))

    wslab = jnp.zeros((R, C), jnp.float32)
    wslab = put(wslab, 0, w1)
    wslab = put(wslab, r1, w2)
    wslab = put(wslab, r2, w3)
    wslab = put(wslab, r3, w4)

    bslab = jnp.zeros((8, C), jnp.float32)
    bslab = bslab.at[0, :hidden_dim].set(b1.reshape(-1).astype(jnp.float32))
    bslab = bslab.at[1, :hidden_dim].set(b2.reshape(-1).astype(jnp.float32))
    bslab = bslab.at[2, :hidden_dim].set(b3.reshape(-1).astype(jnp.float32))
    bslab = bslab.at[3, :out_dim].set(b4.reshape(-1).astype(jnp.float32))
    bslab = bslab.at[4, :out_dim].set(action_mask.reshape(-1).astype(jnp.float32))
    return wslab, bslab, (r1, r2, r3, C)


def _make_kernel(in_dim, out_dim, r1, r2, r3, C):
    def kernel(x_ref, w_ref, b_ref, out_ref):
        bm = b_ref[...]                                        # (8, C) tiny
        # fc1 -> relu
        h = jnp.dot(x_ref[...], w_ref[0:in_dim, :],
                    preferred_element_type=jnp.float32)
        h = jnp.maximum(h + bm[0:1, :], 0.0)
        # fc2 -> relu
        h = jnp.dot(h, w_ref[r1:r1 + C, :],
                    preferred_element_type=jnp.float32)
        h = jnp.maximum(h + bm[1:2, :], 0.0)
        # fc3 -> relu
        h = jnp.dot(h, w_ref[r2:r2 + C, :],
                    preferred_element_type=jnp.float32)
        h = jnp.maximum(h + bm[2:3, :], 0.0)
        # fc4 -> softmax over the action dimension (exact divide)
        logits = jnp.dot(h, w_ref[r3:r3 + C, :],
                         preferred_element_type=jnp.float32) + bm[3:4, :]
        logits = logits[:, :out_dim]
        m = jnp.max(logits, axis=-1, keepdims=True)
        e = jnp.exp(logits - m)
        s = jnp.sum(e, axis=-1, keepdims=True)
        probs = e / s
        # action-mask the distribution (no renormalization, like the reference)
        out_ref[...] = probs * bm[4:5, :out_dim]
    return kernel


def policy_forward(x, action_mask, params, *, b_tile=1024, core_parallel=False):
    """Policy.forward for a single state (in_dim,) or a batch (B, in_dim).

    action_mask: (out_dim,) f32 mask shared across the batch.
    Returns (out_dim,) or (B, out_dim) masked action probabilities.
    Set core_parallel=True on v7x (2 TensorCores) for large batches.
    """
    w1, w4 = params[0], params[6]
    in_dim, hidden_dim = w1.shape
    out_dim = w4.shape[1]

    squeeze = (x.ndim == 1)
    x2 = jnp.atleast_2d(x).astype(jnp.float32)
    B = x2.shape[0]

    # NOTE: in a training loop, pack once and reuse; repacking per call is
    # negligible at these sizes (~13 KB of parameters).
    wslab, bslab, (r1, r2, r3, C) = _pack_params(
        params, action_mask, in_dim, hidden_dim, out_dim)
    kernel = _make_kernel(in_dim, out_dim, r1, r2, r3, C)

    if B <= b_tile:
        # Single full-extent block: no batch pad, no output slice, grid=(1,).
        tile, bp = B, B
    else:
        tile = b_tile
        bp = tile * pl.cdiv(B, tile)
        if bp != B:
            # Only for ragged large batches; the common small-batch RL case
            # never pads.
            x2 = jnp.pad(x2, ((0, bp - B), (0, 0)))

    grid = (bp // tile,)
    sem = (pltpu.CORE_PARALLEL if core_parallel else "arbitrary",)

    out = pl.pallas_call(
        kernel,
        out_shape=jax.ShapeDtypeStruct((bp, out_dim), jnp.float32),
        grid=grid,
        in_specs=[
            pl.BlockSpec((tile, in_dim), lambda i: (i, 0)),   # x: streamed over B
            pl.BlockSpec(wslab.shape, lambda i: (0, 0)),      # weight slab: resident
            pl.BlockSpec(bslab.shape, lambda i: (0, 0)),      # bias/mask slab: resident
        ],
        # Unpadded output block (last dim == full array dim): no 16x write
        # amplification, at the cost of a masked vst on 8 lanes.
        out_specs=pl.BlockSpec((tile, out_dim), lambda i: (i, 0)),
        compiler_params=pltpu.CompilerParams(dimension_semantics=sem),
    )(x2, wslab, bslab)

    if bp != B:
        out = out[:B]
    if squeeze:
        out = out[0]
    return out


def init_policy_params(key, in_dim, hidden_dim, out_dim):
    """Deterministic init mimicking nn.Linear default (uniform +-1/sqrt(fan_in)).

    Weights are stored as (in_features, out_features), i.e. transposed vs. torch.
    """
    dims = [(in_dim, hidden_dim), (hidden_dim, hidden_dim),
            (hidden_dim, hidden_dim), (hidden_dim, out_dim)]
    params = []
    for fan_in, fan_out in dims:
        key, kw, kb = jax.random.split(key, 3)
        bound = 1.0 / jnp.sqrt(jnp.float32(fan_in))
        w = jax.random.uniform(kw, (fan_in, fan_out), jnp.float32, -bound, bound)
        b = jax.random.uniform(kb, (1, fan_out), jnp.float32, -bound, bound)
        params += [w, b]
    return tuple(params)


def policy_forward_ref(x, action_mask, params):
    """Pure-JAX reference matching the PyTorch forward (batched or 1-D)."""
    w1, b1, w2, b2, w3, b3, w4, b4 = params
    x2 = jnp.atleast_2d(x).astype(jnp.float32)
    h = jnp.maximum(x2 @ w1 + b1, 0.0)
    h = jnp.maximum(h @ w2 + b2, 0.0)
    h = jnp.maximum(h @ w3 + b3, 0.0)
    logits = h @ w4 + b4
    probs = jax.nn.softmax(logits, axis=-1)
    out = probs * action_mask
    if x.ndim == 1:
        out = out[0]
    return out


if __name__ == "__main__":
    in_dim, hidden_dim, out_dim = 16, 32, 8

    key = jax.random.PRNGKey(0)
    kp, kx, kb, kl = jax.random.split(key, 4)
    params = init_policy_params(kp, in_dim, hidden_dim, out_dim)

    # deterministic action mask with a few zeroed actions
    action_mask = jnp.array([1, 1, 0, 1, 1, 0, 1, 1], jnp.float32)

    # single state (matches the original nn.Module call pattern)
    x1 = jax.random.normal(kx, (in_dim,), jnp.float32)
    out1 = jax.block_until_ready(policy_forward(x1, action_mask, params))
    ref1 = policy_forward_ref(x1, action_mask, params)
    assert out1.shape == (out_dim,)
    assert jnp.allclose(out1, ref1, atol=2e-3, rtol=2e-3), (out1, ref1)

    # small batch -> single-block path (grid=(1,), no pad, no slice)
    xb = jax.random.normal(kb, (2, in_dim), jnp.float32)
    outb = jax.block_until_ready(policy_forward(xb, action_mask, params))
    refb = policy_forward_ref(xb, action_mask, params)
    assert outb.shape == (2, out_dim)
    assert jnp.allclose(outb, refb, atol=2e-3, rtol=2e-3), (outb, refb)

    # larger ragged batch -> tiled path (multi-step grid, resident slabs)
    xl = jax.random.normal(kl, (2500, in_dim), jnp.float32)
    outl = jax.block_until_ready(policy_forward(xl, action_mask, params,
                                                b_tile=1024))
    refl = policy_forward_ref(xl, action_mask, params)
    assert outl.shape == (2500, out_dim)
    assert jnp.allclose(outl, refl, atol=2e-3, rtol=2e-3)

    print("KERNEL_OK")
</pallas_src>

<mosaic_0001>
module attributes {stable_mosaic.version = 11 : i64} {
  func.func @kernel(%arg0: i32, %arg1: memref<1x16xf32, #tpu.memory_space<vmem>>, %arg2: memref<112x32xf32, #tpu.memory_space<vmem>>, %arg3: memref<8x32xf32, #tpu.memory_space<vmem>>, %arg4: memref<1x8xf32, #tpu.memory_space<vmem>>) attributes {dimension_semantics = [#tpu.dimension_semantics<arbitrary>], iteration_bounds = array<i64: 1>, scalar_prefetch = 0 : i64, scratch_operands = 0 : i64, tpu.core_type = #tpu.core_type<tc>, window_params = [{transform_indices = @transform_0, window_bounds = array<i64: 1, 16>}, {pipeline_mode = #tpu.pipeline_mode<synchronous>, transform_indices = @transform_1, window_bounds = array<i64: 112, 32>}, {pipeline_mode = #tpu.pipeline_mode<synchronous>, transform_indices = @transform_2, window_bounds = array<i64: 8, 32>}, {transform_indices = @transform_3, window_bounds = array<i64: 1, 8>}]} {
    %c0 = arith.constant 0 : index
    %c0_0 = arith.constant 0 : index
    %0 = vector.load %arg3[%c0, %c0_0] : memref<8x32xf32, #tpu.memory_space<vmem>>, vector<8x32xf32>
    %c0_1 = arith.constant 0 : index
    %c0_2 = arith.constant 0 : index
    %1 = vector.load %arg1[%c0_1, %c0_2] : memref<1x16xf32, #tpu.memory_space<vmem>>, vector<1x16xf32>
    %c0_3 = arith.constant 0 : index
    %c0_4 = arith.constant 0 : index
    %2 = vector.load %arg2[%c0_3, %c0_4] : memref<112x32xf32, #tpu.memory_space<vmem>>, vector<16x32xf32>
    %cst = arith.constant dense<0.000000e+00> : vector<1x32xf32>
    %3 = tpu.matmul %1, %2, %cst {dimension_numbers = #tpu.dot_dimension_numbers<[1], [0], [0], [1], [0, 0, 1, 1], [], []>} : vector<1x16xf32>, vector<16x32xf32>, vector<1x32xf32> -> vector<1x32xf32>
    %4 = vector.extract_strided_slice %0 {offsets = [0, 0], sizes = [1, 32], strides = [1, 1]} : vector<8x32xf32> to vector<1x32xf32>
    %5 = arith.addf %3, %4 : vector<1x32xf32>
    %cst_5 = arith.constant 0.000000e+00 : f32
    %6 = vector.broadcast %cst_5 : f32 to vector<1x32xf32>
    %7 = arith.maximumf %5, %6 : vector<1x32xf32>
    %c16 = arith.constant 16 : index
    %c0_6 = arith.constant 0 : index
    %8 = vector.load %arg2[%c16, %c0_6] : memref<112x32xf32, #tpu.memory_space<vmem>>, vector<32x32xf32>
    %cst_7 = arith.constant dense<0.000000e+00> : vector<1x32xf32>
    %9 = tpu.matmul %7, %8, %cst_7 {dimension_numbers = #tpu.dot_dimension_numbers<[1], [0], [0], [1], [0, 0, 1, 1], [], []>} : vector<1x32xf32>, vector<32x32xf32>, vector<1x32xf32> -> vector<1x32xf32>
    %10 = vector.extract_strided_slice %0 {offsets = [1, 0], sizes = [1, 32], strides = [1, 1]} : vector<8x32xf32> to vector<1x32xf32>
    %11 = arith.addf %9, %10 : vector<1x32xf32>
    %cst_8 = arith.constant 0.000000e+00 : f32
    %12 = vector.broadcast %cst_8 : f32 to vector<1x32xf32>
    %13 = arith.maximumf %11, %12 : vector<1x32xf32>
    %c48 = arith.constant 48 : index
    %c0_9 = arith.constant 0 : index
    %14 = vector.load %arg2[%c48, %c0_9] : memref<112x32xf32, #tpu.memory_space<vmem>>, vector<32x32xf32>
    %cst_10 = arith.constant dense<0.000000e+00> : vector<1x32xf32>
    %15 = tpu.matmul %13, %14, %cst_10 {dimension_numbers = #tpu.dot_dimension_numbers<[1], [0], [0], [1], [0, 0, 1, 1], [], []>} : vector<1x32xf32>, vector<32x32xf32>, vector<1x32xf32> -> vector<1x32xf32>
    %16 = vector.extract_strided_slice %0 {offsets = [2, 0], sizes = [1, 32], strides = [1, 1]} : vector<8x32xf32> to vector<1x32xf32>
    %17 = arith.addf %15, %16 : vector<1x32xf32>
    %cst_11 = arith.constant 0.000000e+00 : f32
    %18 = vector.broadcast %cst_11 : f32 to vector<1x32xf32>
    %19 = arith.maximumf %17, %18 : vector<1x32xf32>
    %c80 = arith.constant 80 : index
    %c0_12 = arith.constant 0 : index
    %20 = vector.load %arg2[%c80, %c0_12] : memref<112x32xf32, #tpu.memory_space<vmem>>, vector<32x32xf32>
    %cst_13 = arith.constant dense<0.000000e+00> : vector<1x32xf32>
    %21 = tpu.matmul %19, %20, %cst_13 {dimension_numbers = #tpu.dot_dimension_numbers<[1], [0], [0], [1], [0, 0, 1, 1], [], []>} : vector<1x32xf32>, vector<32x32xf32>, vector<1x32xf32> -> vector<1x32xf32>
    %22 = vector.extract_strided_slice %0 {offsets = [3, 0], sizes = [1, 32], strides = [1, 1]} : vector<8x32xf32> to vector<1x32xf32>
    %23 = arith.addf %21, %22 : vector<1x32xf32>
    %24 = vector.extract_strided_slice %23 {offsets = [0, 0], sizes = [1, 8], strides = [1, 1]} : vector<1x32xf32> to vector<1x8xf32>
    %cst_14 = arith.constant dense<0xFF800000> : vector<1xf32>
    %25 = vector.multi_reduction <maximumf>, %24, %cst_14 [1] : vector<1x8xf32> to vector<1xf32>
    %26 = vector.shape_cast %25 : vector<1xf32> to vector<1x1xf32>
    %27 = vector.broadcast %26 : vector<1x1xf32> to vector<1x8xf32>
    %28 = arith.subf %24, %27 : vector<1x8xf32>
    %29 = math.exp %28 : vector<1x8xf32>
    %cst_15 = arith.constant dense<0.000000e+00> : vector<1xf32>
    %30 = vector.multi_reduction <add>, %29, %cst_15 [1] : vector<1x8xf32> to vector<1xf32>
    %31 = vector.shape_cast %30 : vector<1xf32> to vector<1x1xf32>
    %32 = vector.broadcast %31 : vector<1x1xf32> to vector<1x8xf32>
    %33 = arith.divf %29, %32 : vector<1x8xf32>
    %34 = vector.extract_strided_slice %0 {offsets = [4, 0], sizes = [1, 8], strides = [1, 1]} : vector<8x32xf32> to vector<1x8xf32>
    %35 = arith.mulf %33, %34 : vector<1x8xf32>
    %c0_16 = arith.constant 0 : index
    %c0_17 = arith.constant 0 : index
    %36 = vector.load %arg4[%c0_16, %c0_17] : memref<1x8xf32, #tpu.memory_space<vmem>>, vector<1x8xf32>
    tpu.vector_store %arg4[%c0_16, %c0_17], %35 {strides = array<i32>} : memref<1x8xf32, #tpu.memory_space<vmem>>, vector<1x8xf32>,
    return
  }
  func.func @transform_0(%arg0: i32) -> (i32, i32) {
    %c0_i32 = arith.constant 0 : i32
    %c0_i32_0 = arith.constant 0 : i32
    return %arg0, %c0_i32 : i32, i32
  }
  func.func @transform_1(%arg0: i32) -> (i32, i32) {
    %c0_i32 = arith.constant 0 : i32
    %c0_i32_0 = arith.constant 0 : i32
    %c0_i32_1 = arith.constant 0 : i32
    return %c0_i32, %c0_i32_0 : i32, i32
  }
  func.func @transform_2(%arg0: i32) -> (i32, i32) {
    %c0_i32 = arith.constant 0 : i32
    %c0_i32_0 = arith.constant 0 : i32
    %c0_i32_1 = arith.constant 0 : i32
    return %c0_i32, %c0_i32_0 : i32, i32
  }
  func.func @transform_3(%arg0: i32) -> (i32, i32) {
    %c0_i32 = arith.constant 0 : i32
    %c0_i32_0 = arith.constant 0 : i32
    return %arg0, %c0_i32 : i32, i32
  }
}

</mosaic_0001>

<bundles_post_ra>
// kernel: tpu_custom_call.1
= control target key start
LH: loop header
LB: loop body
LE: loop exit
PB: predicated region body
PF: predicated region fallthrough
CT: control target
= control target key end

     0   :  { %v456_v1 = vmov 0.0   ;;  %vm457_vm0 = vmmov 0   ;;  %s540_s0 = inlined_call_operand.vmem [shape: f32[1,16], index: 0, kind: input, shape index: {}]   ;;  %s541_s1 = inlined_call_operand.vmem [shape: f32[112,32], index: 1, kind: input, shape index: {}]   ;;  %s542_s2 = inlined_call_operand.vmem [shape: f32[8,32], index: 2, kind: input, shape index: {}]   ;;  %s543_s3 = inlined_call_operand.hbm [shape: f32[1,8], index: 3, kind: output, shape index: {}]  }
   0x1   :  { %v18_v0 = vld [vmem:[%s541_s1 + $0x8] sm:$0xff]  ;;  %387 = vmatprep.subr.mxu0 %v456_v1  ;;  %v17_v2 = vld [vmem:[%s541_s1] sm:$0xff]  ;;  %391 = vmatprep.mubr.msk.f32.mxu0 %vm457_vm0, %v456_v1 }
   0x2   :  { %v97_v3 = vld [vmem:[%s541_s1 + $0x28] sm:$0xff] }
   0x3   :  { %8 = vsyncpa [#allocation3], 0  ;;  %388 = vmatpush3.msra.mxu0 %v18_v0  ;;  %v16_v4 = vld [vmem:[%s540_s0] sm:$0x1]  ;;  %vm19_vm1 = vcmask 130048   ;;  %394 = vmatprep.subr.mxu1 %v456_v1  ;;  %v95_v6 = vld [vmem:[%s541_s1 + $0x18] sm:$0xff] }
   0x4   :  { %389 = vmatprep.subr.mxu0 %v456_v1  ;;  %395 = vmatpush3.msra.mxu1 %v97_v3  ;;  %v96_v5 = vld [vmem:[%s541_s1 + $0x20] sm:$0xff]  ;;  %v94_v7 = vld [vmem:[%s541_s1 + $0x10] sm:$0xff]  ;;  %v179_v8 = vld [vmem:[%s541_s1 + $0x48] sm:$0xff]  ;;  %vm101_vm2 = vcmask 261120   ;;  %vm335_vm3 = vcmask 57344  }
   0x5   :  { %390 = vmatpush3.msra.mxu0 %v17_v2  ;;  %396 = vmatprep.subr.mxu1 %v456_v1  ;;  %v15_v9 = vld [vmem:[%s542_s2] sm:$0xff]  ;;  %v177_v15 = vld [vmem:[%s541_s1 + $0x38] sm:$0xff]  ;;  %v176_v16 = vld [vmem:[%s541_s1 + $0x30] sm:$0xff] }
   0x6   :  { %392 = vmatmul.mubr.msk.f32.vlgmr.msra.gmra.mxu0 %vm19_vm1, %v16_v4  ;;  %402 = vmatprep.mubr.msk.f32.mxu1 %vm457_vm0, %v456_v1  ;;  %v178_v14 = vld [vmem:[%s541_s1 + $0x40] sm:$0xff]  ;;  %v259_v17 = vld [vmem:[%s541_s1 + $0x68] sm:$0xff]  ;;  %v99_v18 = vrot.slane %v15_v9, 1  ;;  %v257_v24 = vld [vmem:[%s541_s1 + $0x58] sm:$0xff]  ;;  %v180_v26 = vrot.slane %v15_v9, 2  ;;  %v260_v31 = vrot.slane %v15_v9, 3 }
   0x7   :  { %405 = vmatprep.subr.mxu0 %v456_v1  ;;  %413 = vmatprep.mubr.msk.f32.mxu0 %vm457_vm0, %v456_v1  ;;  %v258_v23 = vld [vmem:[%s541_s1 + $0x60] sm:$0xff]  ;;  %v256_v25 = vld [vmem:[%s541_s1 + $0x50] sm:$0xff]  ;;  %v347_v42 = vrot.slane %v15_v9, 4  ;;  %s458_s1 = smov [#allocation2]  }
   0x8   :  { %397 = vmatpush3.msra.mxu1 %v96_v5  ;;  %406 = vmatpush3.msra.mxu0 %v179_v8  ;;  %s357_s15 = sshll.u32 %s458_s1, 4  ;;  %s358_s15 = int_to_ptr.vmem [resolvable:$true] %s357_s15 }
   0x9   :  { %398 = vmatprep.subr.mxu1 %v456_v1  ;;  %407 = vmatprep.subr.mxu0 %v456_v1  ;;  %s434_s16 = scalar_lea.vmem %s358_s15, 16  ;;  %s438_s17 = scalar_lea.vmem %s358_s15, 32 }
   0xa   :  { %399 = vmatpush3.msra.mxu1 %v95_v6  ;;  %408 = vmatpush3.msra.mxu0 %v178_v14  ;;  %p435_p0 = scmp.ne.s32.totalorder %s358_s15, %s434_s16  ;;  %p439_p1 = scmp.lt.s32.totalorder %s358_s15, %s358_s15 }
   0xb   :  { %400 = vmatprep.subr.mxu1 %v456_v1  ;;  %409 = vmatprep.subr.mxu0 %v456_v1  ;;  %p440_p2 = scmp.lt.s32.totalorder %s438_s17, %s434_s16 }
   0xc   :  { %401 = vmatpush3.msra.mxu1 %v94_v7  ;;  %410 = vmatpush3.msra.mxu0 %v177_v15 }
   0xd   :  { %416 = vmatprep.subr.mxu1 %v456_v1  ;;  %411 = vmatprep.subr.mxu0 %v456_v1  ;;  %p441_p3 = por %p440_p2, %p439_p1 }
   0xe   :  { %412 = vmatpush3.msra.mxu0 %v176_v16 }
   0xf   :  { %p442_p4 = pnand %p441_p3, %p435_p0 }
  0xc6   :  { %v89_v10 = vpop.f32.mrf.mxu0 }
  0xc7   :  { %v90_v11 = vadd.f32 %v89_v10, %v15_v9 }
  0xc8   :  { %v393_v12 = vpop.f32.mrf.mxu0 }
  0xc9   :  { %v93_v13 = vmax.f32 %v90_v11, 0.0 }
  0xcb   :  { %403 = vmatmul.mubr.msk.f32.vlgmr.msra.gmra.mxu1 %vm101_vm2, %v93_v13 }
  0xcc   :  { %424 = vmatprep.mubr.msk.f32.mxu1 %vm457_vm0, %v456_v1  ;;  %417 = vmatpush3.msra.mxu1 %v259_v17 }
  0xcd   :  { %418 = vmatprep.subr.mxu1 %v456_v1 }
  0xce   :  { %419 = vmatpush3.msra.mxu1 %v258_v23 }
  0xcf   :  { %420 = vmatprep.subr.mxu1 %v456_v1 }
  0xd0   :  { %421 = vmatpush3.msra.mxu1 %v257_v24 }
  0xd1   :  { %422 = vmatprep.subr.mxu1 %v456_v1 }
  0xd2   :  { %423 = vmatpush3.msra.mxu1 %v256_v25 }
 0x18b   :  { %v171_v19 = vpop.f32.mrf.mxu1 }
 0x18c   :  { %v172_v20 = vadd.f32 %v171_v19, %v99_v18 }
 0x18d   :  { %v404_v21 = vpop.f32.mrf.mxu1 }
 0x18e   :  { %v175_v22 = vmax.f32 %v172_v20, 0.0 }
 0x190   :  { %414 = vmatmul.mubr.msk.f32.vlgmr.msra.gmra.mxu0 %vm101_vm2, %v175_v22 }
 0x250   :  { %v251_v27 = vpop.f32.mrf.mxu0 }
 0x251   :  { %v252_v28 = vadd.f32 %v251_v27, %v180_v26 }
 0x252   :  { %v415_v29 = vpop.f32.mrf.mxu0 }
 0x253   :  { %v255_v30 = vmax.f32 %v252_v28, 0.0 }
 0x255   :  { %425 = vmatmul.mubr.msk.f32.vlgmr.msra.gmra.mxu1 %vm101_vm2, %v255_v30 }
 0x315   :  { %v331_v32 = vpop.f32.mrf.mxu1 }
 0x316   :  { %v332_v33 = vadd.f32 %v331_v32, %v260_v31 }
 0x317   :  { %v426_v34 = vpop.f32.mrf.mxu1 }
 0x318   :  { %v336_v35 = vsel %vm335_vm3, %v332_v33, -inf }
 0x319   :  { %337 = vmax.xlane.f32.xlu0 %v336_v35 }
 0x3a2   :  { %v338_v36 = vpop.xlane.xlu0 %337 }
 0x3a3   :  { %v339_v37 = vsub.f32 %v332_v33, %v338_v36 }
 0x3a5   :  { %v340_v38 = vmul.f32 1.442695, %v339_v37 }
 0x3a7   :  { %430 = vpow2.f32 %v340_v38 }
 0x3b4   :  { %v431_v39 = vpop.eup %430 }
 0x3b5   :  { %v342_v40 = vsel %vm335_vm3, %v431_v39, 0.0 }
 0x3b6   :  { %343 = vadd.xlane.f32.xlu0 %v342_v40 }
 0x43f   :  { %v344_v41 = vpop.xlane.xlu0 %343 }
 0x440   :  { %432 = vrcp.f32 %v344_v41 }
 0x44d   :  { %v433_v43 = vpop.eup %432 }
 0x44e   :  { %v346_v44 = vmul.f32 %v433_v43, %v431_v39 }
 0x450   :  { %v349_v45 = vmul.f32 %v347_v42, %v346_v44 }
 0x452   :  { %350 = vst.msk [vmem:[#allocation2] sm:$0x1] %vm335_vm3, %v349_v45 }
 0x453   :  { %445 = shalt.err (!%p442_p4)
}
 0x454   :  { %360 = dma.vmem_to_hbm [thread:$0]  %s358_s15, 16, %s543_s3, [#allocation3]  }
 0x455   :  { %454 = dma.done.wait [#allocation3], 16  }
 0x456   :  { %455 = vsyncadd [#allocation3], 4294967280 }
 0x457   :  { %364 = vsyncpa [#allocation3], 1 }

</bundles_post_ra>
